<compile_context>
chip_gen: v6e
topology: v6e:2x2x1
jax: 0.10.0
libtpu: 0.0.40
codegen_flags: <defaults>
</compile_context>

<pallas_src>
import functools
from typing import NamedTuple

import jax
import jax.numpy as jnp
from jax.experimental import pallas as pl
from jax.experimental.pallas import tpu as pltpu


def _round_up(x, m):
    return (x + m - 1) // m * m


def _cdiv(a, b):
    return (a + b - 1) // b


def _vmem_capacity_bytes():
    try:
        return int(pltpu.get_tpu_info().vmem_capacity_bytes)
    except Exception:
        return 64 * 1024 * 1024   # conservative fallback (v7x per-TC VMEM)


# ----------------------------------------------------------------------------
# One-time weight preparation (hoisted out of the per-call forward path).
# ----------------------------------------------------------------------------
class PreparedParams(NamedTuple):
    w1f: jax.Array       # [kdim, nf_pad]  = [fc.T | mlp1.T], matmul dtype
    b1f: jax.Array       # [1, nf_pad]     f32
    w2t: jax.Array       # [hidden_pad, embed_pad], matmul dtype
    b2r: jax.Array       # [1, embed_pad]  f32
    img_dim: int
    embed_size: int
    embed_pad: int
    nk: int              # number of K-reduction grid steps over img_dim


def prepare_params(params, *, use_bf16=False, weight_budget_bytes=None):
    """Transpose, fuse, lane-pad and (optionally) bf16-cast the weights once.

    Cache the returned PreparedParams and pass it to encoder_image() so the
    transpose/concat (a full HBM read+write of the weights) is not repeated
    every forward call.
    """
    fc_w, fc_b, w1, b1, w2, b2 = params
    embed_size, img_dim = fc_w.shape
    hidden = w1.shape[0]

    mm_dtype = jnp.bfloat16 if use_bf16 else jnp.float32
    mm_bytes = 2 if use_bf16 else 4

    embed_pad = _round_up(embed_size, 128)
    hidden_pad = _round_up(hidden, 128)
    nf_pad = embed_pad + hidden_pad

    if weight_budget_bytes is None:
        weight_budget_bytes = int(0.35 * _vmem_capacity_bytes())

    # K-blocking over img_dim: keep the resident first-layer weight block
    # within budget.  nk == 1 (no K loop) for typical sizes.
    kdim0 = _round_up(img_dim, 128)
    nk = 1
    while (_cdiv(kdim0, nk) * nf_pad * mm_bytes > weight_budget_bytes
           and _cdiv(kdim0, nk) > 128):
        nk += 1
    tk = _round_up(_cdiv(kdim0, nk), 128)
    kdim = tk * nk

    # Fused first-layer weight/bias; zero padding keeps the math exact
    # (padded hidden cols -> 0 pre-act -> 0 after ReLU; padded embed cols -> 0).
    w1f = jnp.zeros((kdim, nf_pad), jnp.float32)
    w1f = w1f.at[:img_dim, :embed_size].set(fc_w.T)
    w1f = w1f.at[:img_dim, embed_pad:embed_pad + hidden].set(w1.T)
    b1f = jnp.zeros((1, nf_pad), jnp.float32)
    b1f = b1f.at[0, :embed_size].set(fc_b)
    b1f = b1f.at[0, embed_pad:embed_pad + hidden].set(b1)

    w2t = jnp.zeros((hidden_pad, embed_pad), jnp.float32)
    w2t = w2t.at[:hidden, :embed_size].set(w2.T)
    b2r = jnp.zeros((1, embed_pad), jnp.float32)
    b2r = b2r.at[0, :embed_size].set(b2)

    return PreparedParams(
        w1f=w1f.astype(mm_dtype), b1f=b1f, w2t=w2t.astype(mm_dtype), b2r=b2r,
        img_dim=int(img_dim), embed_size=int(embed_size),
        embed_pad=int(embed_pad), nk=int(nk))


# ----------------------------------------------------------------------------
# Kernel
# ----------------------------------------------------------------------------
def _encoder_image_kernel(x_ref, w1_ref, b1_ref, w2_ref, b2_ref, out_ref,
                          acc_ref, *, embed_pad, no_imgnorm, approx_recip):
    """Fused EncoderImage forward for one (row tile, K block) grid step.

    x_ref  : [tm, tk]                         (matmul dtype)
    w1_ref : [tk, embed_pad + hidden_pad]     (fc | mlp layer-1, matmul dtype)
    b1_ref : [1, embed_pad + hidden_pad]      f32
    w2_ref : [hidden_pad, embed_pad]          (mlp layer-2, matmul dtype)
    b2_ref : [1, embed_pad]                   f32
    out_ref: [tm, embed_pad]                  f32
    acc_ref: [tm, embed_pad + hidden_pad]     f32 accumulator scratch
    """
    k = pl.program_id(1)

    @pl.when(k == 0)
    def _init():
        acc_ref[...] = jnp.zeros_like(acc_ref)

    # Fused first layer (fc projection + MLP hidden pre-activation) in one
    # MXU pass per K block, accumulating in f32.
    acc_ref[...] += jnp.dot(x_ref[...], w1_ref[...],
                            preferred_element_type=jnp.float32)

    @pl.when(k == pl.num_programs(1) - 1)
    def _finalize():
        h_all = acc_ref[...] + b1_ref[...]
        fc_out = h_all[:, :embed_pad]                     # 128-lane aligned view
        hidden = jnp.maximum(h_all[:, embed_pad:], 0.0)   # ReLU

        feats = (fc_out
                 + jnp.dot(hidden.astype(w2_ref.dtype), w2_ref[...],
                           preferred_element_type=jnp.float32)
                 + b2_ref[...])

        if not no_imgnorm:
            # l2norm: X / (sqrt(sum(X^2, -1)) + 1e-8); padded cols are exact 0.
            norm = jnp.sqrt(jnp.sum(feats * feats, axis=-1, keepdims=True)) + 1e-8
            if approx_recip:
                feats = feats * pl.reciprocal(norm, approx=True)  # EUP slot
            else:
                feats = feats / norm                              # exact (f32 path)

        out_ref[...] = feats.astype(out_ref.dtype)


# ----------------------------------------------------------------------------
# Forward
# ----------------------------------------------------------------------------
def _vmem_bytes_estimate(tm, tk, nk, nf_pad, hidden_pad, embed_pad, mm_bytes):
    f32 = 4
    # x row tiles / output tiles are double-buffered by the pipeline.
    io = 2 * tm * tk * mm_bytes + 2 * tm * embed_pad * f32
    # Weights: first-layer block is double-buffered only when K-blocked; the
    # constant-index blocks are single-buffered (pl.Buffered(1)).
    w1_bufs = 2 if nk > 1 else 1
    weights = (w1_bufs * tk * nf_pad * mm_bytes + nf_pad * f32
               + hidden_pad * embed_pad * mm_bytes + embed_pad * f32)
    acc = tm * nf_pad * f32                        # accumulator scratch
    interm = tm * (nf_pad + 2 * embed_pad) * f32   # epilogue temporaries (rough)
    return io + weights + acc + interm


@functools.partial(jax.jit,
                   static_argnames=("tm", "nk", "embed_pad", "no_imgnorm",
                                    "approx_recip", "vmem_limit"))
def _encoder_image_flat(x, w1f, b1f, w2t, b2r, *, tm, nk, embed_pad,
                        no_imgnorm, approx_recip, vmem_limit):
    """x: [N, img_dim] f32; prepared weights from prepare_params()."""
    N, img_dim = x.shape
    kdim, nf_pad = w1f.shape
    tk = kdim // nk
    mm_dtype = w1f.dtype

    # Pad rows up to a tm multiple and features up to the lane-padded /
    # K-blocked kdim; cast to the matmul dtype (halves the x DMA for bf16).
    n_rows = _round_up(max(N, 1), tm)
    x = jnp.pad(x, ((0, n_rows - N), (0, kdim - img_dim))).astype(mm_dtype)

    kernel = functools.partial(_encoder_image_kernel, embed_pad=embed_pad,
                               no_imgnorm=no_imgnorm, approx_recip=approx_recip)

    out = pl.pallas_call(
        kernel,
        out_shape=jax.ShapeDtypeStruct((n_rows, embed_pad), jnp.float32),
        grid_spec=pltpu.PrefetchScalarGridSpec(
            num_scalar_prefetch=0,
            grid=(n_rows // tm, nk),
            in_specs=[
                # x row tile: double-buffered (changes every step).
                pl.BlockSpec((tm, tk), lambda i, k: (i, k)),
                # Fused first-layer weight: single-buffer unless K-blocked.
                pl.BlockSpec((tk, nf_pad), lambda i, k: (k, 0),
                             pipeline_mode=pl.Buffered(2 if nk > 1 else 1)),
                # Constant-index weight/bias blocks: single-buffered.
                pl.BlockSpec((1, nf_pad), lambda i, k: (0, 0),
                             pipeline_mode=pl.Buffered(1)),
                pl.BlockSpec(w2t.shape, lambda i, k: (0, 0),
                             pipeline_mode=pl.Buffered(1)),
                pl.BlockSpec((1, embed_pad), lambda i, k: (0, 0),
                             pipeline_mode=pl.Buffered(1)),
            ],
            out_specs=pl.BlockSpec((tm, embed_pad), lambda i, k: (i, 0)),
            scratch_shapes=[pltpu.VMEM((tm, nf_pad), jnp.float32)],
        ),
        compiler_params=pltpu.CompilerParams(
            dimension_semantics=("parallel", "arbitrary"),
            vmem_limit_bytes=vmem_limit,
        ),
    )(x, w1f, b1f, w2t, b2r)

    return out[:N, :]


def encoder_image(images, params, *, no_imgnorm=False, use_bf16=False, tm=None):
    """EncoderImage.forward. images: [..., img_dim] -> [..., embed_size].

    `params` is either the raw (fc_w, fc_b, w1, b1, w2, b2) tuple (PyTorch
    [out, in] layout) or a cached PreparedParams from prepare_params().
    """
    prep = params if isinstance(params, PreparedParams) else prepare_params(
        params, use_bf16=use_bf16)

    img_dim, embed_size, embed_pad = prep.img_dim, prep.embed_size, prep.embed_pad
    assert images.shape[-1] == img_dim
    x = images.reshape(-1, img_dim)
    N = x.shape[0]

    kdim, nf_pad = prep.w1f.shape
    hidden_pad = prep.w2t.shape[0]
    tk = kdim // prep.nk
    use_bf16_mm = prep.w1f.dtype == jnp.bfloat16
    mm_bytes = 2 if use_bf16_mm else 4

    # Generation-aware VMEM budget (v5e/v6e 128 MiB, v7x 64 MiB per TC).
    cap = _vmem_capacity_bytes()
    budget = int(0.70 * cap)
    vmem_limit = int(0.75 * cap)

    if tm is None:
        # Biggest row tile that fits (amortize ~0.35us/step pipeline overhead),
        # but keep >= 2 row-grid steps when there are enough rows so the
        # "parallel" axis can shard across both v7x TensorCores.
        tm = min(512, _round_up(max(N, 1), 16))
        if N >= 64:
            tm = min(tm, _round_up(_cdiv(N, 2), 16))
        while tm > 16 and _vmem_bytes_estimate(
                tm, tk, prep.nk, nf_pad, hidden_pad, embed_pad, mm_bytes) > budget:
            tm = max(16, _round_up(tm // 2, 16))

    out = _encoder_image_flat(
        x, prep.w1f, prep.b1f, prep.w2t, prep.b2r,
        tm=tm, nk=prep.nk, embed_pad=embed_pad, no_imgnorm=no_imgnorm,
        approx_recip=use_bf16_mm, vmem_limit=vmem_limit)

    out = out[:, :embed_size]
    return out.reshape(images.shape[:-1] + (embed_size,))


# ----------------------------------------------------------------------------
# Parameter init + pure-JAX reference (module semantics)
# ----------------------------------------------------------------------------
def init_params(key, img_dim, embed_size):
    """Parameters matching EncoderImage: fc (Xavier, zero bias) + 2-layer MLP."""
    hidden = embed_size // 2
    k = jax.random.split(key, 3)

    r = (6.0 ** 0.5) / ((img_dim + embed_size) ** 0.5)
    fc_w = jax.random.uniform(k[0], (embed_size, img_dim), jnp.float32, -r, r)
    fc_b = jnp.zeros((embed_size,), jnp.float32)

    def lin(kk, fan_out, fan_in):
        kw, kb = jax.random.split(kk)
        bound = 1.0 / (fan_in ** 0.5)
        w = jax.random.uniform(kw, (fan_out, fan_in), jnp.float32, -bound, bound)
        b = jax.random.uniform(kb, (fan_out,), jnp.float32, -bound, bound)
        return w, b

    w1, b1 = lin(k[1], hidden, img_dim)       # Linear(img_dim, embed//2)
    w2, b2 = lin(k[2], embed_size, hidden)    # Linear(embed//2, embed)
    return (fc_w, fc_b, w1, b1, w2, b2)


def reference(images, params, *, no_imgnorm=False):
    fc_w, fc_b, w1, b1, w2, b2 = params
    x = images.reshape(-1, images.shape[-1])
    fc = x @ fc_w.T + fc_b
    h = jnp.maximum(x @ w1.T + b1, 0.0)
    f = fc + (h @ w2.T + b2)
    if not no_imgnorm:
        norm = jnp.sqrt(jnp.sum(f * f, axis=-1, keepdims=True)) + 1e-8
        f = f / norm
    return f.reshape(images.shape[:-1] + (fc_w.shape[0],))


if __name__ == "__main__":
    batch, n_regions = 2, 8
    img_dim, embed_size = 128, 128

    key = jax.random.PRNGKey(0)
    k_img, k_p = jax.random.split(key)
    images = jax.random.normal(k_img, (batch, n_regions, img_dim), jnp.float32)
    params = init_params(k_p, img_dim, embed_size)
    ref = reference(images, params)

    # f32 path (exact module semantics); weight prep hoisted/cached.
    prep32 = prepare_params(params, use_bf16=False)
    feats = encoder_image(images, prep32)
    jax.block_until_ready(feats)
    assert feats.shape == (batch, n_regions, embed_size)
    assert jnp.allclose(feats, ref, atol=5e-5, rtol=5e-5), float(
        jnp.max(jnp.abs(feats - ref)))

    # bf16 matmul path (MXU rate, f32 accumulate + f32 epilogue); looser tol.
    prep16 = prepare_params(params, use_bf16=True)
    feats16 = encoder_image(images, prep16)
    jax.block_until_ready(feats16)
    assert feats16.shape == (batch, n_regions, embed_size)
    assert jnp.allclose(feats16, ref, atol=5e-2, rtol=5e-2), float(
        jnp.max(jnp.abs(feats16 - ref)))

    print("KERNEL_OK")
</pallas_src>

<mosaic_0001>
module attributes {stable_mosaic.version = 11 : i64} {
  func.func @_encoder_image_kernel(%arg0: i32, %arg1: i32, %arg2: memref<16x128xf32, #tpu.memory_space<vmem>>, %arg3: memref<128x256xf32, #tpu.memory_space<vmem>>, %arg4: memref<1x256xf32, #tpu.memory_space<vmem>>, %arg5: memref<128x128xf32, #tpu.memory_space<vmem>>, %arg6: memref<1x128xf32, #tpu.memory_space<vmem>>, %arg7: memref<16x128xf32, #tpu.memory_space<vmem>>, %arg8: memref<16x256xf32, #tpu.memory_space<vmem>>) attributes {dimension_semantics = [#tpu.dimension_semantics<parallel>, #tpu.dimension_semantics<arbitrary>], iteration_bounds = array<i64: 1, 1>, scalar_prefetch = 0 : i64, scratch_operands = 1 : i64, tpu.core_type = #tpu.core_type<tc>, window_params = [{transform_indices = @transform_0, window_bounds = array<i64: 16, 128>}, {pipeline_mode = #tpu.pipeline_mode<synchronous>, transform_indices = @transform_1, window_bounds = array<i64: 128, 256>}, {pipeline_mode = #tpu.pipeline_mode<synchronous>, transform_indices = @transform_2, window_bounds = array<i64: 1, 256>}, {pipeline_mode = #tpu.pipeline_mode<synchronous>, transform_indices = @transform_3, window_bounds = array<i64: 128, 128>}, {pipeline_mode = #tpu.pipeline_mode<synchronous>, transform_indices = @transform_4, window_bounds = array<i64: 1, 128>}, {transform_indices = @transform_5, window_bounds = array<i64: 16, 128>}]} {
    %c0_i32 = arith.constant 0 : i32
    %0 = arith.cmpi eq, %arg1, %c0_i32 : i32
    %1 = arith.extui %0 : i1 to i32
    %c0_i32_0 = arith.constant 0 : i32
    %2 = arith.cmpi ne, %1, %c0_i32_0 : i32
    scf.if %2 {
      %cst_10 = arith.constant 0.000000e+00 : f32
      %12 = vector.broadcast %cst_10 : f32 to vector<16x256xf32>
      %c0_11 = arith.constant 0 : index
      %c0_12 = arith.constant 0 : index
      %13 = vector.load %arg8[%c0_11, %c0_12] : memref<16x256xf32, #tpu.memory_space<vmem>>, vector<16x256xf32>
      tpu.vector_store %arg8[%c0_11, %c0_12], %12 {strides = array<i32>} : memref<16x256xf32, #tpu.memory_space<vmem>>, vector<16x256xf32>,
    } else {
    }
    %c0 = arith.constant 0 : index
    %c0_1 = arith.constant 0 : index
    %3 = vector.load %arg8[%c0, %c0_1] : memref<16x256xf32, #tpu.memory_space<vmem>>, vector<16x256xf32>
    %c0_2 = arith.constant 0 : index
    %c0_3 = arith.constant 0 : index
    %4 = vector.load %arg2[%c0_2, %c0_3] : memref<16x128xf32, #tpu.memory_space<vmem>>, vector<16x128xf32>
    %c0_4 = arith.constant 0 : index
    %c0_5 = arith.constant 0 : index
    %5 = vector.load %arg3[%c0_4, %c0_5] : memref<128x256xf32, #tpu.memory_space<vmem>>, vector<128x256xf32>
    %cst = arith.constant dense<0.000000e+00> : vector<16x256xf32>
    %6 = tpu.matmul %4, %5, %cst {dimension_numbers = #tpu.dot_dimension_numbers<[1], [0], [0], [1], [0, 0, 1, 1], [], []>} : vector<16x128xf32>, vector<128x256xf32>, vector<16x256xf32> -> vector<16x256xf32>
    %7 = arith.addf %3, %6 : vector<16x256xf32>
    %c0_6 = arith.constant 0 : index
    %c0_7 = arith.constant 0 : index
    %8 = vector.load %arg8[%c0_6, %c0_7] : memref<16x256xf32, #tpu.memory_space<vmem>>, vector<16x256xf32>
    tpu.vector_store %arg8[%c0_6, %c0_7], %7 {strides = array<i32>} : memref<16x256xf32, #tpu.memory_space<vmem>>, vector<16x256xf32>,
    %c0_i32_8 = arith.constant 0 : i32
    %9 = arith.cmpi eq, %arg1, %c0_i32_8 : i32
    %10 = arith.extui %9 : i1 to i32
    %c0_i32_9 = arith.constant 0 : i32
    %11 = arith.cmpi ne, %10, %c0_i32_9 : i32
    scf.if %11 {
      %c0_10 = arith.constant 0 : index
      %c0_11 = arith.constant 0 : index
      %12 = vector.load %arg8[%c0_10, %c0_11] : memref<16x256xf32, #tpu.memory_space<vmem>>, vector<16x256xf32>
      %c0_12 = arith.constant 0 : index
      %c0_13 = arith.constant 0 : index
      %13 = vector.load %arg4[%c0_12, %c0_13] : memref<1x256xf32, #tpu.memory_space<vmem>>, vector<1x256xf32>
      %14 = vector.broadcast %13 : vector<1x256xf32> to vector<16x256xf32>
      %15 = arith.addf %12, %14 : vector<16x256xf32>
      %16 = vector.extract_strided_slice %15 {offsets = [0, 0], sizes = [16, 128], strides = [1, 1]} : vector<16x256xf32> to vector<16x128xf32>
      %17 = vector.extract_strided_slice %15 {offsets = [0, 128], sizes = [16, 128], strides = [1, 1]} : vector<16x256xf32> to vector<16x128xf32>
      %cst_14 = arith.constant 0.000000e+00 : f32
      %18 = vector.broadcast %cst_14 : f32 to vector<16x128xf32>
      %19 = arith.maximumf %17, %18 : vector<16x128xf32>
      %c0_15 = arith.constant 0 : index
      %c0_16 = arith.constant 0 : index
      %20 = vector.load %arg5[%c0_15, %c0_16] : memref<128x128xf32, #tpu.memory_space<vmem>>, vector<128x128xf32>
      %cst_17 = arith.constant dense<0.000000e+00> : vector<16x128xf32>
      %21 = tpu.matmul %19, %20, %cst_17 {dimension_numbers = #tpu.dot_dimension_numbers<[1], [0], [0], [1], [0, 0, 1, 1], [], []>} : vector<16x128xf32>, vector<128x128xf32>, vector<16x128xf32> -> vector<16x128xf32>
      %22 = arith.addf %16, %21 : vector<16x128xf32>
      %c0_18 = arith.constant 0 : index
      %c0_19 = arith.constant 0 : index
      %23 = vector.load %arg6[%c0_18, %c0_19] : memref<1x128xf32, #tpu.memory_space<vmem>>, vector<1x128xf32>
      %24 = vector.broadcast %23 : vector<1x128xf32> to vector<16x128xf32>
      %25 = arith.addf %22, %24 : vector<16x128xf32>
      %26 = arith.mulf %25, %25 : vector<16x128xf32>
      %cst_20 = arith.constant dense<0.000000e+00> : vector<16xf32>
      %27 = vector.multi_reduction <add>, %26, %cst_20 [1] : vector<16x128xf32> to vector<16xf32>
      %28 = vector.shape_cast %27 : vector<16xf32> to vector<16x1xf32>
      %29 = math.sqrt %28 : vector<16x1xf32>
      %cst_21 = arith.constant 9.99999993E-9 : f32
      %30 = vector.broadcast %cst_21 : f32 to vector<16x1xf32>
      %31 = arith.addf %29, %30 : vector<16x1xf32>
      %32 = vector.broadcast %31 : vector<16x1xf32> to vector<16x128xf32>
      %33 = arith.divf %25, %32 : vector<16x128xf32>
      %c0_22 = arith.constant 0 : index
      %c0_23 = arith.constant 0 : index
      %34 = vector.load %arg7[%c0_22, %c0_23] : memref<16x128xf32, #tpu.memory_space<vmem>>, vector<16x128xf32>
      tpu.vector_store %arg7[%c0_22, %c0_23], %33 {strides = array<i32>} : memref<16x128xf32, #tpu.memory_space<vmem>>, vector<16x128xf32>,
    } else {
    }
    return
  }
  func.func @transform_0(%arg0: i32, %arg1: i32) -> (i32, i32) {
    %c0_i32 = arith.constant 0 : i32
    return %arg0, %arg1 : i32, i32
  }
  func.func @transform_1(%arg0: i32, %arg1: i32) -> (i32, i32) {
    %c0_i32 = arith.constant 0 : i32
    %c0_i32_0 = arith.constant 0 : i32
    return %arg1, %c0_i32 : i32, i32
  }
  func.func @transform_2(%arg0: i32, %arg1: i32) -> (i32, i32) {
    %c0_i32 = arith.constant 0 : i32
    %c0_i32_0 = arith.constant 0 : i32
    %c0_i32_1 = arith.constant 0 : i32
    return %c0_i32, %c0_i32_0 : i32, i32
  }
  func.func @transform_3(%arg0: i32, %arg1: i32) -> (i32, i32) {
    %c0_i32 = arith.constant 0 : i32
    %c0_i32_0 = arith.constant 0 : i32
    %c0_i32_1 = arith.constant 0 : i32
    return %c0_i32, %c0_i32_0 : i32, i32
  }
  func.func @transform_4(%arg0: i32, %arg1: i32) -> (i32, i32) {
    %c0_i32 = arith.constant 0 : i32
    %c0_i32_0 = arith.constant 0 : i32
    %c0_i32_1 = arith.constant 0 : i32
    return %c0_i32, %c0_i32_0 : i32, i32
  }
  func.func @transform_5(%arg0: i32, %arg1: i32) -> (i32, i32) {
    %c0_i32 = arith.constant 0 : i32
    %c0_i32_0 = arith.constant 0 : i32
    return %arg0, %c0_i32 : i32, i32
  }
}

</mosaic_0001>

<bundles_post_ra>
// kernel: _encoder_image_flat.1
= control target key start
LH: loop header
LB: loop body
LE: loop exit
PB: predicated region body
PF: predicated region fallthrough
CT: control target
= control target key end

     0   :  { %10 = vsyncpa [#allocation4], 0  ;;  %s591_s0 = inlined_call_operand.hbm [shape: f32[16,128], index: 0, kind: input, shape index: {}]   ;;  %s592_s1 = inlined_call_operand.hbm [shape: f32[128,256], index: 1, kind: input, shape index: {}]   ;;  %s593_s2 = inlined_call_operand.vmem [shape: f32[1,256], index: 2, kind: input, shape index: {}]   ;;  %s594_s3 = inlined_call_operand.hbm [shape: f32[128,128], index: 3, kind: input, shape index: {}]   ;;  %s595_s4 = inlined_call_operand.vmem [shape: f32[1,128], index: 4, kind: input, shape index: {}]   ;;  %s596_s5 = inlined_call_operand.hbm [shape: f32[16,128], index: 5, kind: output, shape index: {}]  }
   0x1   :  { %11 = vsyncpa [#allocation7], 0 }
   0x2   :  { %12 = vsyncpa [#allocation5], 0  ;;  %s523_s18 = smov [#allocation6]  }
   0x3   :  { %s30_s19 = sshll.u32 %s523_s18, 4  ;;  %s31_s19 = int_to_ptr.vmem [resolvable:$true] %s30_s19 }
   0x4   :  { %s445_s20 = scalar_lea.vmem %s31_s19, 4096  ;;  %p450_p1 = scmp.lt.s32.totalorder %s31_s19, %s31_s19 }
   0x5   :  { %p446_p0 = scmp.ne.s32.totalorder %s31_s19, %s445_s20  ;;  %p451_p2 = scmp.lt.s32.totalorder %s445_s20, %s445_s20 }
   0x7   :  { %p452_p3 = por %p451_p2, %p450_p1 }
   0x9   :  { %p453_p4 = pnand %p452_p3, %p446_p0 }
   0xb   :  { %456 = shalt.err (!%p453_p4)
}
   0xc   :  { %s524_s21 = smov 256   ;;  %s525_s22 = smov 16  }
   0xd   :  { %36 = dma.hbm_to_vmem [thread:$0]  %s592_s1, 4096, %s31_s19, [#allocation7], %s524_s21, %s524_s21, %s525_s22  }
   0xe   :  { %s526_s25 = smov [#allocation3]  }
   0xf   :  { %s18_s26 = sshll.u32 %s526_s25, 4  ;;  %s19_s26 = int_to_ptr.vmem [resolvable:$true] %s18_s26 }
  0x10   :  { %s465_s27 = scalar_lea.vmem %s19_s26, 256  ;;  %p470_p6 = scmp.lt.s32.totalorder %s19_s26, %s19_s26 }
  0x11   :  { %p466_p5 = scmp.ne.s32.totalorder %s19_s26, %s465_s27  ;;  %p471_p7 = scmp.lt.s32.totalorder %s465_s27, %s465_s27 }
  0x13   :  { %p472_p8 = por %p471_p7, %p470_p6 }
  0x15   :  { %p473_p9 = pnand %p472_p8, %p466_p5 }
  0x17   :  { %476 = shalt.err (!%p473_p9)
}
  0x18   :  { %s527_s28 = smov 128   ;;  %s528_s29 = smov 8  }
  0x19   :  { %24 = dma.hbm_to_vmem [thread:$0]  %s591_s0, 256, %s19_s26, [#allocation4], %s527_s28, %s527_s28, %s528_s29  }
  0x1a   :  { %s529_s1 = smov [#allocation8]  }
  0x1b   :  { %s44_s7 = sshll.u32 %s529_s1, 4  ;;  %s45_s7 = int_to_ptr.vmem [resolvable:$true] %s44_s7 }
  0x1c   :  { %s485_s8 = scalar_lea.vmem %s45_s7, 2048  ;;  %p490_p11 = scmp.lt.s32.totalorder %s45_s7, %s45_s7 }
  0x1d   :  { %p486_p10 = scmp.ne.s32.totalorder %s45_s7, %s485_s8  ;;  %p491_p12 = scmp.lt.s32.totalorder %s485_s8, %s485_s8 }
  0x1f   :  { %p492_p13 = por %p491_p12, %p490_p11 }
  0x21   :  { %p493_p0 = pnand %p492_p13, %p486_p10 }
  0x23   :  { %496 = shalt.err (!%p493_p0)
}
  0x24   :  { %50 = dma.hbm_to_vmem [thread:$0]  %s594_s3, 2048, %s45_s7, [#allocation7], %s527_s28, %s527_s28, %s528_s29  }
  0x25   :  { %517 = dma.done.wait [#allocation4], 256  }
  0x26   :  { %518 = vsyncadd [#allocation4], 4294967040 }
  0x27   :  { %519 = dma.done.wait [#allocation7], 6144  }
  0x28   :  { %520 = vsyncadd [#allocation7], 4294961152  ;;  %v530_v0 = vmov 0.0   ;;  %v107_v1 = vld [vmem:[#allocation6 + $0xf8] sm:$0xff]  ;;  %v106_v2 = vld [vmem:[#allocation6 + $0xf0] sm:$0xff]  ;;  %v202_v46 = vlaneseq }
  0x29   :  { %172 = vmatprep.mubr.f32.mxu0 %v530_v0  ;;  %v105_v3 = vld [vmem:[#allocation6 + $0xe8] sm:$0xff]  ;;  %108 = vmatprep.subr.mxu0 %v107_v1  ;;  %v104_v4 = vld [vmem:[#allocation6 + $0xe0] sm:$0xff]  ;;  %v103_v5 = vld [vmem:[#allocation6 + $0xd8] sm:$0xff] }
  0x2a   :  { %109 = vmatpush1.msra.mxu0 %v106_v2  ;;  %v102_v6 = vld [vmem:[#allocation6 + $0xd0] sm:$0xff]  ;;  %v101_v7 = vld [vmem:[#allocation6 + $0xc8] sm:$0xff]  ;;  %v100_v8 = vld [vmem:[#allocation6 + $0xc0] sm:$0xff]  ;;  %v203_v47 = vshrl.u32 %v202_v46, 7 }
  0x2b   :  { %110 = vmatprep.subr.mxu0 %v105_v3  ;;  %v99_v9 = vld [vmem:[#allocation6 + $0xb8] sm:$0xff]  ;;  %v98_v10 = vld [vmem:[#allocation6 + $0xb0] sm:$0xff]  ;;  %v97_v11 = vld [vmem:[#allocation6 + $0xa8] sm:$0xff] }
  0x2c   :  { %111 = vmatpush1.msra.mxu0 %v104_v4  ;;  %v96_v12 = vld [vmem:[#allocation6 + $0xa0] sm:$0xff]  ;;  %v95_v13 = vld [vmem:[#allocation6 + $0x98] sm:$0xff]  ;;  %v94_v14 = vld [vmem:[#allocation6 + $0x90] sm:$0xff]  ;;  %v204_v48 = vsub.s32 0, %v203_v47  ;;  %v208_v56 = vsub.s32 1, %v203_v47 }
  0x2d   :  { %112 = vmatprep.subr.mxu0 %v103_v5  ;;  %v233_v15 = vld [vmem:[#allocation8 + $0x78] sm:$0xff]  ;;  %v232_v16 = vld [vmem:[#allocation8 + $0x70] sm:$0xff]  ;;  %v93_v17 = vld [vmem:[#allocation6 + $0x88] sm:$0xff] }
  0x2e   :  { %113 = vmatpush1.msra.mxu0 %v102_v6  ;;  %385 = vmatprep.subr.mxu1 %v233_v15  ;;  %v92_v18 = vld [vmem:[#allocation6 + $0x80] sm:$0xff]  ;;  %v231_v19 = vld [vmem:[#allocation8 + $0x68] sm:$0xff]  ;;  %v91_v20 = vld [vmem:[#allocation6 + $0x78] sm:$0xff] }
  0x2f   :  { %114 = vmatprep.subr.mxu0 %v101_v7  ;;  %386 = vmatpush3.msra.mxu1 %v233_v15  ;;  %v90_v21 = vld [vmem:[#allocation6 + $0x70] sm:$0xff]  ;;  %v230_v22 = vld [vmem:[#allocation8 + $0x60] sm:$0xff]  ;;  %v89_v23 = vld [vmem:[#allocation6 + $0x68] sm:$0xff] }
  0x30   :  { %115 = vmatpush1.msra.mxu0 %v100_v8  ;;  %387 = vmatprep.subr.mxu1 %v232_v16  ;;  %v88_v24 = vld [vmem:[#allocation6 + $0x60] sm:$0xff]  ;;  %v229_v25 = vld [vmem:[#allocation8 + $0x58] sm:$0xff]  ;;  %v86_v27 = vld [vmem:[#allocation6 + $0x50] sm:$0xff] }
  0x31   :  { %116 = vmatprep.subr.mxu0 %v99_v9  ;;  %388 = vmatpush3.msra.mxu1 %v232_v16  ;;  %v87_v26 = vld [vmem:[#allocation6 + $0x58] sm:$0xff]  ;;  %v228_v28 = vld [vmem:[#allocation8 + $0x50] sm:$0xff]  ;;  %v85_v29 = vld [vmem:[#allocation6 + $0x48] sm:$0xff] }
  0x32   :  { %117 = vmatpush1.msra.mxu0 %v98_v10  ;;  %389 = vmatprep.subr.mxu1 %v231_v19  ;;  %v84_v30 = vld [vmem:[#allocation6 + $0x40] sm:$0xff]  ;;  %v227_v31 = vld [vmem:[#allocation8 + $0x48] sm:$0xff]  ;;  %v83_v32 = vld [vmem:[#allocation6 + $0x38] sm:$0xff] }
  0x33   :  { %118 = vmatprep.subr.mxu0 %v97_v11  ;;  %390 = vmatpush3.msra.mxu1 %v231_v19  ;;  %v82_v33 = vld [vmem:[#allocation6 + $0x30] sm:$0xff]  ;;  %v226_v34 = vld [vmem:[#allocation8 + $0x40] sm:$0xff]  ;;  %v81_v35 = vld [vmem:[#allocation6 + $0x28] sm:$0xff] }
  0x34   :  { %119 = vmatpush1.msra.mxu0 %v96_v12  ;;  %391 = vmatprep.subr.mxu1 %v230_v22  ;;  %v80_v36 = vld [vmem:[#allocation6 + $0x20] sm:$0xff]  ;;  %v225_v37 = vld [vmem:[#allocation8 + $0x38] sm:$0xff]  ;;  %v78_v39 = vld [vmem:[#allocation6 + $0x10] sm:$0xff] }
  0x35   :  { %120 = vmatprep.subr.mxu0 %v95_v13  ;;  %392 = vmatpush3.msra.mxu1 %v230_v22  ;;  %v79_v38 = vld [vmem:[#allocation6 + $0x18] sm:$0xff]  ;;  %v224_v40 = vld [vmem:[#allocation8 + $0x30] sm:$0xff]  ;;  %v77_v41 = vld [vmem:[#allocation6 + $0x8] sm:$0xff] }
  0x36   :  { %121 = vmatpush1.msra.mxu0 %v94_v14  ;;  %393 = vmatprep.subr.mxu1 %v229_v25  ;;  %v76_v42 = vld [vmem:[#allocation6] sm:$0xff]  ;;  %v223_v43 = vld [vmem:[#allocation8 + $0x28] sm:$0xff]  ;;  %v74_v44 = vld [vmem:[#allocation3] sm:$0xff] }
  0x37   :  { %122 = vmatprep.subr.mxu0 %v93_v17  ;;  %394 = vmatpush3.msra.mxu1 %v229_v25  ;;  %v75_v45 = vld [vmem:[#allocation3 + $0x8] sm:$0xff]  ;;  %v200_v49 = vld [vmem:[%s593_s2] sm:$0x3]  ;;  %v222_v51 = vld [vmem:[#allocation8 + $0x20] sm:$0xff] }
  0x38   :  { %123 = vmatpush1.msra.mxu0 %v92_v18  ;;  %395 = vmatprep.subr.mxu1 %v228_v28  ;;  %v205_v50 = vrot.slane %v200_v49, %v204_v48  ;;  %v221_v52 = vld [vmem:[#allocation8 + $0x18] sm:$0xff]  ;;  %v220_v53 = vld [vmem:[#allocation8 + $0x10] sm:$0xff]  ;;  %v219_v54 = vld [vmem:[#allocation8 + $0x8] sm:$0xff]  ;;  %v209_v57 = vrot.slane %v200_v49, %v208_v56 }
  0x39   :  { %124 = vmatprep.subr.mxu0 %v91_v20  ;;  %396 = vmatpush3.msra.mxu1 %v228_v28  ;;  %v218_v55 = vld [vmem:[#allocation8] sm:$0xff]  ;;  %v366_v8 = vld [vmem:[%s595_s4] ss:$0 sm:$0xff]  ;;  %s531_s4 = smov [#allocation9]  }
  0x3a   :  { %125 = vmatpush1.msra.mxu0 %v90_v21  ;;  %397 = vmatprep.subr.mxu1 %v227_v31  ;;  %s353_s12 = sshll.u32 %s531_s4, 4  ;;  %s354_s12 = int_to_ptr.vmem [resolvable:$true] %s353_s12 }
  0x3b   :  { %126 = vmatprep.subr.mxu0 %v89_v23  ;;  %398 = vmatpush3.msra.mxu1 %v227_v31  ;;  %s497_s13 = scalar_lea.vmem %s354_s12, 256  ;;  %p502_p2 = scmp.lt.s32.totalorder %s354_s12, %s354_s12 }
  0x3c   :  { %127 = vmatpush1.msra.mxu0 %v88_v24  ;;  %399 = vmatprep.subr.mxu1 %v226_v34  ;;  %p498_p1 = scmp.ne.s32.totalorder %s354_s12, %s497_s13  ;;  %p503_p3 = scmp.lt.s32.totalorder %s497_s13, %s497_s13 }
  0x3d   :  { %128 = vmatprep.subr.mxu0 %v87_v26  ;;  %400 = vmatpush3.msra.mxu1 %v226_v34 }
  0x3e   :  { %129 = vmatpush1.msra.mxu0 %v86_v27  ;;  %401 = vmatprep.subr.mxu1 %v225_v37  ;;  %p504_p4 = por %p503_p3, %p502_p2 }
  0x3f   :  { %130 = vmatprep.subr.mxu0 %v85_v29  ;;  %402 = vmatpush3.msra.mxu1 %v225_v37 }
  0x40   :  { %131 = vmatpush1.msra.mxu0 %v84_v30  ;;  %403 = vmatprep.subr.mxu1 %v224_v40  ;;  %p505_p5 = pnand %p504_p4, %p498_p1 }
  0x41   :  { %132 = vmatprep.subr.mxu0 %v83_v32  ;;  %404 = vmatpush3.msra.mxu1 %v224_v40 }
  0x42   :  { %133 = vmatpush1.msra.mxu0 %v82_v33  ;;  %405 = vmatprep.subr.mxu1 %v223_v43 }
  0x43   :  { %134 = vmatprep.subr.mxu0 %v81_v35  ;;  %406 = vmatpush3.msra.mxu1 %v223_v43 }
  0x44   :  { %135 = vmatpush1.msra.mxu0 %v80_v36  ;;  %407 = vmatprep.subr.mxu1 %v222_v51 }
  0x45   :  { %136 = vmatprep.subr.mxu0 %v79_v38  ;;  %408 = vmatpush3.msra.mxu1 %v222_v51 }
  0x46   :  { %137 = vmatpush1.msra.mxu0 %v78_v39  ;;  %409 = vmatprep.subr.mxu1 %v221_v52 }
  0x47   :  { %138 = vmatprep.subr.mxu0 %v77_v41  ;;  %410 = vmatpush3.msra.mxu1 %v221_v52 }
  0x48   :  { %139 = vmatpush1.msra.mxu0 %v76_v42  ;;  %411 = vmatprep.subr.mxu1 %v220_v53 }
  0x49   :  { %173 = vmatmul.mubr.f32.vlgmr.msra.gmra.mxu0 %v74_v44  ;;  %412 = vmatpush3.msra.mxu1 %v220_v53 }
  0x4a   :  { %178 = vmatprep.mubr.f32.mxu0 %v530_v0  ;;  %413 = vmatprep.subr.mxu1 %v219_v54 }
  0x4b   :  { %414 = vmatpush3.msra.mxu1 %v219_v54 }
  0x4c   :  { %415 = vmatprep.subr.mxu1 %v218_v55 }
  0x4d   :  { %179 = vmatmul.mubr.f32.gmra.mxu0 %v75_v45  ;;  %416 = vmatpush3.msra.mxu1 %v218_v55 }
 0x109   :  { %v174_v58 = vpop.f32.mrf.mxu0 }
 0x10a   :  { %v212_v59 = vadd.f32 %v205_v50, %v174_v58 }
 0x10b   :  { %v176_v60 = vpop.f32.mrf.mxu0 }
 0x10c   :  { %v213_v61 = vadd.f32 %v209_v57, %v176_v60 }
 0x10d   :  { %v180_v62 = vpop.f32.mrf.mxu0 }
 0x10e   :  { %v214_v63 = vadd.f32 %v205_v50, %v180_v62  ;;  %v216_v0 = vmax.f32 %v213_v61, 0.0 }
 0x10f   :  { %v182_v1 = vpop.f32.mrf.mxu0 }
 0x110   :  { %v215_v2 = vadd.f32 %v209_v57, %v182_v1  ;;  %417 = vmatprep.mubr.f32.mxu1 %v216_v0 }
 0x112   :  { %v217_v3 = vmax.f32 %v215_v2, 0.0 }
 0x114   :  { %418 = vmatmul.mubr.f32.vlgmr.msra.gmra.mxu1 %v217_v3 }
 0x1d4   :  { %v419_v4 = vpop.f32.mrf.mxu1 }
 0x1d5   :  { %v310_v6 = vadd.f32 %v419_v4, %v214_v63 }
 0x1d6   :  { %v300_v5 = vpop.f32.mrf.mxu1 }
 0x1d7   :  { %v309_v7 = vadd.f32 %v300_v5, %v212_v59  ;;  %v319_v10 = vadd.f32 %v366_v8, %v310_v6 }
 0x1d9   :  { %v318_v9 = vadd.f32 %v366_v8, %v309_v7  ;;  %v321_v12 = vmul.f32 %v319_v10, %v319_v10 }
 0x1db   :  { %v320_v11 = vmul.f32 %v318_v9, %v318_v9 }
 0x1dd   :  { %322 = vadd.xlane.f32.xlu0 %v320_v11 }
 0x1e1   :  { %324 = vadd.xlane.f32.xlu0 %v321_v12 }
 0x266   :  { %v323_v13 = vpop.xlane.xlu0 %322 }
 0x267   :  { %429 = vrsqrt.f32 %v323_v13  ;;  %vm328_vm0 = vcmp.eq.f32.partialorder %v323_v13, inf  ;;  %v331_v17 = vand.u32 2147483648, %v323_v13  ;;  %vm330_vm1 = vcmp.eq.f32.partialorder %v323_v13, 0.0 }
 0x26a   :  { %v325_v14 = vpop.xlane.xlu0 %324 }
 0x26b   :  { %431 = vrsqrt.f32 %v325_v14  ;;  %vm335_vm2 = vcmp.eq.f32.partialorder %v325_v14, inf  ;;  %v338_v23 = vand.u32 2147483648, %v325_v14  ;;  %vm337_vm3 = vcmp.eq.f32.partialorder %v325_v14, 0.0 }
 0x274   :  { %v430_v15 = vpop.eup %429 }
 0x275   :  { %v327_v16 = vmul.f32 %v430_v15, %v323_v13 }
 0x277   :  { %v329_v18 = vsel %vm328_vm0, %v323_v13, %v327_v16 }
 0x278   :  { %v432_v19 = vpop.eup %431  ;;  %v332_v20 = vsel %vm330_vm1, %v331_v17, %v329_v18 }
 0x279   :  { %v340_v21 = vadd.f32 1e-08, %v332_v20  ;;  %v334_v22 = vmul.f32 %v432_v19, %v325_v14 }
 0x27b   :  { %433 = vrcp.f32 %v340_v21  ;;  %v336_v24 = vsel %vm335_vm2, %v325_v14, %v334_v22 }
 0x27c   :  { %v339_v25 = vsel %vm337_vm3, %v338_v23, %v336_v24 }
 0x27d   :  { %v341_v26 = vadd.f32 1e-08, %v339_v25 }
 0x27f   :  { %435 = vrcp.f32 %v341_v26 }
 0x288   :  { %v434_v27 = vpop.eup %433 }
 0x289   :  { %v343_v28 = vmul.f32 %v434_v27, %v318_v9 }
 0x28b   :  { %346 = vst [vmem:[#allocation9] sm:$0xff] %v343_v28 }
 0x28c   :  { %v436_v29 = vpop.eup %435 }
 0x28d   :  { %v345_v30 = vmul.f32 %v436_v29, %v319_v10 }
 0x28f   :  { %347 = vst [vmem:[#allocation9 + $0x8] sm:$0xff] %v345_v30 }
 0x290   :  { %508 = shalt.err (!%p505_p5)
}
 0x291   :  { %359 = dma.vmem_to_hbm [thread:$0]  %s354_s12, 256, %s596_s5, [#allocation5], %s527_s28, %s527_s28, %s528_s29  }
 0x292   :  { %521 = dma.done.wait [#allocation5], 256  }
 0x293   :  { %522 = vsyncadd [#allocation5], 4294967040 }
 0x294   :  { %363 = vsyncpa [#allocation4], 1 }
 0x295   :  { %364 = vsyncpa [#allocation7], 1 }
 0x296   :  { %365 = vsyncpa [#allocation5], 1 }

</bundles_post_ra>
